<compile_context>
chip_gen: v7x
topology: tpu7x:2x2x1
jax: 0.10.0
libtpu: 0.0.40
codegen_flags: <defaults>
</compile_context>

<pallas_src>
import jax
import jax.numpy as jnp
from jax.experimental import pallas as pl
from jax.experimental.pallas import tpu as pltpu


def netb_kernel(x_ref, w_ref, o_ref):
    # MXU: f32 x f32 -> f32 (highest precision; accuracy matches the f32 ref).
    a = jnp.dot(
        x_ref[...],
        w_ref[...],
        preferred_element_type=jnp.float32,
        precision=jax.lax.Precision.HIGHEST,
    )
    # Numerically stable SiLU, all in f32:
    #   z = exp(-|a|)                        (EUP)
    #   sigmoid(a) = 1/(1+z)        a >= 0
    #              = z/(1+z)        a <  0
    z = jnp.exp(-jnp.abs(a))
    inv = 1.0 / (1.0 + z)  # exact reciprocal: free at this size, tighter error
    sig = jnp.where(a >= 0, inv, z * inv)
    o_ref[...] = a * sig


@jax.jit
def netb_forward(x, w):
    M, K = x.shape
    Kw, N = w.shape
    assert K == Kw

    bytes_accessed = x.size * 4 + w.size * 4 + M * N * 4
    return pl.pallas_call(
        netb_kernel,
        out_shape=jax.ShapeDtypeStruct((M, N), jnp.float32),
        in_specs=[
            pl.BlockSpec(memory_space=pltpu.MemorySpace.VMEM),
            pl.BlockSpec(memory_space=pltpu.MemorySpace.VMEM),
        ],
        out_specs=pl.BlockSpec(memory_space=pltpu.MemorySpace.VMEM),
        cost_estimate=pl.CostEstimate(
            flops=2 * M * K * N,
            transcendentals=M * N,
            bytes_accessed=bytes_accessed,
        ),
    )(x, w)


if __name__ == "__main__":
    key = jax.random.PRNGKey(0)
    kx, kw = jax.random.split(key)

    # Deterministic synthetic inputs / parameters matching NetB's __init__.
    x = jax.random.normal(kx, (4, 512), dtype=jnp.float32)
    w = jax.random.normal(kw, (512, 128), dtype=jnp.float32) * 3.0

    out = netb_forward(x, w)
    jax.block_until_ready(out)

    # Full-precision f32 reference (HIGHEST so the reference matmul itself is
    # not silently truncated to bf16 by XLA's TPU default).
    ref = jax.nn.silu(
        jnp.dot(x, w, precision=jax.lax.Precision.HIGHEST)
    )
    assert out.shape == (4, 128)
    assert jnp.allclose(out, ref, atol=2e-3, rtol=1e-3), float(
        jnp.max(jnp.abs(out - ref))
    )

    print("KERNEL_OK")
</pallas_src>

<mosaic_0001>
module attributes {stable_mosaic.version = 11 : i64} {
  func.func @netb_kernel(%arg0: memref<4x512xf32, #tpu.memory_space<vmem>>, %arg1: memref<512x128xf32, #tpu.memory_space<vmem>>, %arg2: memref<4x128xf32, #tpu.memory_space<vmem>>) attributes {dimension_semantics = [], scalar_prefetch = 0 : i64, scratch_operands = 0 : i64, tpu.core_type = #tpu.core_type<tc>} {
    %c0 = arith.constant 0 : index
    %c0_0 = arith.constant 0 : index
    %0 = vector.load %arg0[%c0, %c0_0] : memref<4x512xf32, #tpu.memory_space<vmem>>, vector<4x512xf32>
    %c0_1 = arith.constant 0 : index
    %c0_2 = arith.constant 0 : index
    %1 = vector.load %arg1[%c0_1, %c0_2] : memref<512x128xf32, #tpu.memory_space<vmem>>, vector<512x128xf32>
    %cst = arith.constant dense<0.000000e+00> : vector<4x128xf32>
    %2 = tpu.matmul %0, %1, %cst {dimension_numbers = #tpu.dot_dimension_numbers<[1], [0], [0], [1], [0, 0, 1, 1], [], []>, precision = #tpu.contract_precision<fp32>} : vector<4x512xf32>, vector<512x128xf32>, vector<4x128xf32> -> vector<4x128xf32>
    %3 = math.absf %2 : vector<4x128xf32>
    %cst_3 = arith.constant 0.000000e+00 : f32
    %4 = vector.broadcast %cst_3 : f32 to vector<4x128xf32>
    %5 = arith.subf %4, %3 : vector<4x128xf32>
    %6 = math.exp %5 : vector<4x128xf32>
    %cst_4 = arith.constant 1.000000e+00 : f32
    %7 = vector.broadcast %cst_4 : f32 to vector<4x128xf32>
    %8 = arith.addf %7, %6 : vector<4x128xf32>
    %cst_5 = arith.constant 1.000000e+00 : f32
    %9 = vector.broadcast %cst_5 : f32 to vector<4x128xf32>
    %10 = arith.divf %9, %8 : vector<4x128xf32>
    %cst_6 = arith.constant 0.000000e+00 : f32
    %11 = vector.broadcast %cst_6 : f32 to vector<4x128xf32>
    %12 = arith.cmpf oge, %2, %11 : vector<4x128xf32>
    %13 = arith.mulf %6, %10 : vector<4x128xf32>
    %14 = arith.select %12, %10, %13 : vector<4x128xi1>, vector<4x128xf32>
    %15 = arith.mulf %2, %14 : vector<4x128xf32>
    %c0_7 = arith.constant 0 : index
    %c0_8 = arith.constant 0 : index
    %16 = vector.load %arg2[%c0_7, %c0_8] : memref<4x128xf32, #tpu.memory_space<vmem>>, vector<4x128xf32>
    tpu.vector_store %arg2[%c0_7, %c0_8], %15 {strides = array<i32>} : memref<4x128xf32, #tpu.memory_space<vmem>>, vector<4x128xf32>,
    return
  }
}

</mosaic_0001>

<bundles_post_ra>
// kernel: netb_forward.1
= control target key start
LH: loop header
LB: loop body
LE: loop exit
PB: predicated region body
PF: predicated region fallthrough
CT: control target
= control target key end

     0   :  { %7 = vsyncpa [#allocation3], 0  ;;  %s3713_s0 = inlined_call_operand.hbm [shape: f32[4,512], index: 0, kind: input, shape index: {}]   ;;  %s3714_s1 = inlined_call_operand.hbm [shape: f32[512,128], index: 1, kind: input, shape index: {}]   ;;  %s3715_s2 = inlined_call_operand.hbm [shape: f32[4,128], index: 2, kind: output, shape index: {}]  }
   0x1   :  { %8 = vsyncpa [#allocation6], 0 }
   0x2   :  { %9 = vsyncpa [#allocation4], 0  ;;  %s2749_s9 = smov [#allocation2]   ;;  %s2750_s11 = smov [#allocation5]  }
   0x3   :  { %s16_s10 = sshll.u32 %s2749_s9, 4  ;;  %s25_s12 = sshll.u32 %s2750_s11, 4  ;;  %s17_s10 = int_to_ptr.vmem [resolvable:$true] %s16_s10  ;;  %s2769_s12 = int_to_ptr.vmem [resolvable:$true] %s25_s12 }
   0x4   :  { %s2677_s15 = scalar_lea.hbm %s3713_s0, 256 }
   0x5   :  { %p2678_p0 = scmp.ne.s32.totalorder %s3713_s0, %s2677_s15  ;;  %p2681_p1 = scmp.lt.u32.totalorder %s2677_s15, %s3713_s0 }
   0x7   :  { %p2683_p2 = pnand %p2681_p1, %p2678_p0 }
   0x9   :  { %2686 = shalt.err (!%p2683_p2)
}
   0xa   :  { %s2687_s20 = scalar_lea.vmem %s17_s10, 256  ;;  %p2692_p4 = scmp.lt.s32.totalorder %s17_s10, %s17_s10 }
   0xb   :  { %p2688_p3 = scmp.ne.s32.totalorder %s17_s10, %s2687_s20  ;;  %p2693_p5 = scmp.lt.s32.totalorder %s2687_s20, %s2687_s20 }
   0xd   :  { %p2694_p6 = por %p2693_p5, %p2692_p4 }
   0xf   :  { %p2695_p7 = pnand %p2694_p6, %p2688_p3 }
  0x11   :  { %2698 = shalt.err (!%p2695_p7)
}
  0x12   :  { %19 = dma.hbm_to_vmem [thread:$0]  %s3713_s0, 256, %s17_s10, [#allocation3]  }
  0x13   :  { %s2699_s25 = scalar_lea.hbm %s3714_s1, 8192 }
  0x14   :  { %p2700_p8 = scmp.ne.s32.totalorder %s3714_s1, %s2699_s25  ;;  %p2703_p9 = scmp.lt.u32.totalorder %s2699_s25, %s3714_s1 }
  0x16   :  { %p2705_p10 = pnand %p2703_p9, %p2700_p8 }
  0x18   :  { %2708 = shalt.err (!%p2705_p10)
}
  0x19   :  { %s2709_s30 = scalar_lea.vmem %s2769_s12, 8192  ;;  %p2714_p12 = scmp.lt.s32.totalorder %s2769_s12, %s2769_s12 }
  0x1a   :  { %p2710_p11 = scmp.ne.s32.totalorder %s2769_s12, %s2709_s30  ;;  %p2715_p13 = scmp.lt.s32.totalorder %s2709_s30, %s2709_s30 }
  0x1c   :  { %p2716_p0 = por %p2715_p13, %p2714_p12 }
  0x1e   :  { %p2717_p1 = pnand %p2716_p0, %p2710_p11 }
  0x20   :  { %2720 = shalt.err (!%p2717_p1)
}
  0x21   :  { %s2751_s0 = smov 128   ;;  %s2752_s3 = smov 8  }
  0x22   :  { %31 = dma.hbm_to_vmem [thread:$0]  %s3714_s1, 8192, %s2769_s12, [#allocation6], %s2751_s0, %s2751_s0, %s2752_s3  }
  0x23   :  { %2743 = dma.done.wait [#allocation3], 256  }
  0x24   :  { %2744 = vsyncadd [#allocation3], 4294967040 }
  0x25   :  { %2745 = dma.done.wait [#allocation6], 8192  }
  0x26   :  { %2746 = vsyncadd [#allocation6], 4294959104  ;;  %v56_v0 = vld [vmem:[#allocation5 + $0x80] sm:$0xff]  ;;  %v57_v1 = vld [vmem:[#allocation5 + $0x88] sm:$0xff]  ;;  %s2753_s1 = smov [#allocation7]  }
  0x27   :  { %v40_v2 = vld [vmem:[#allocation5] sm:$0xff]  ;;  %v159_v3 = vand.u32 4294901760, %v56_v0  ;;  %v162_v4 = vand.u32 4294901760, %v57_v1  ;;  %v41_v5 = vld [vmem:[#allocation5 + $0x8] sm:$0xff]  ;;  %v58_v7 = vld [vmem:[#allocation5 + $0x90] sm:$0xff]  ;;  %s1852_s6 = sshll.u32 %s2753_s1, 4  ;;  %s1853_s6 = int_to_ptr.vmem [resolvable:$true] %s1852_s6 }
  0x28   :  { %v111_v6 = vand.u32 4294901760, %v40_v2  ;;  %v59_v8 = vld [vmem:[#allocation5 + $0x98] sm:$0xff]  ;;  %v114_v9 = vand.u32 4294901760, %v41_v5  ;;  %v165_v10 = vand.u32 4294901760, %v58_v7  ;;  %v42_v12 = vld [vmem:[#allocation5 + $0x10] sm:$0xff]  ;;  %v60_v18 = vld [vmem:[#allocation5 + $0xa0] sm:$0xff]  ;;  %p2726_p3 = scmp.lt.s32.totalorder %s1853_s6, %s1853_s6 }
  0x29   :  { %v168_v11 = vand.u32 4294901760, %v59_v8  ;;  %v43_v13 = vld [vmem:[#allocation5 + $0x18] sm:$0xff]  ;;  %v2800_v14 = vpack.c.bf16 %v162_v4, %v159_v3  ;;  %v117_v16 = vand.u32 4294901760, %v42_v12  ;;  %v61_v19 = vld [vmem:[#allocation5 + $0xa8] sm:$0xff]  ;;  %v44_v23 = vld [vmem:[#allocation5 + $0x20] sm:$0xff]  ;;  %v171_v29 = vand.u32 4294901760, %v60_v18 }
  0x2a   :  { %v2802_v15 = vsub.f32 %v40_v2, %v111_v6  ;;  %v120_v17 = vand.u32 4294901760, %v43_v13  ;;  %v2804_v20 = vpack.c.bf16 %v114_v9, %v111_v6  ;;  %v2806_v21 = vsub.f32 %v41_v5, %v114_v9  ;;  %v45_v24 = vld [vmem:[#allocation5 + $0x28] sm:$0xff]  ;;  %v62_v37 = vld [vmem:[#allocation5 + $0xb0] sm:$0xff]  ;;  %v63_v42 = vld [vmem:[#allocation5 + $0xb8] sm:$0xff]  ;;  %s2721_s7 = scalar_lea.vmem %s1853_s6, 64 }
  0x2b   :  { %v2808_v22 = vpack.c.bf16 %v168_v11, %v165_v10  ;;  %2283 = vmatprep.subr.bf16.mxu0 %v2800_v14  ;;  %v2811_v25 = vsub.f32 %v58_v7, %v165_v10  ;;  %v2813_v26 = vsub.f32 %v59_v8, %v168_v11  ;;  %v2817_v28 = vsub.f32 %v42_v12, %v117_v16  ;;  %v46_v55 = vld [vmem:[#allocation5 + $0x30] sm:$0xff]  ;;  %v47_v56 = vld [vmem:[#allocation5 + $0x38] sm:$0xff]  ;;  %v64_v5 = vld [vmem:[#allocation5 + $0xc0] sm:$0xff]  ;;  %p2722_p2 = scmp.ne.s32.totalorder %s1853_s6, %s2721_s7  ;;  %p2727_p4 = scmp.lt.s32.totalorder %s2721_s7, %s2721_s7 }
  0x2c   :  { %v2815_v27 = vpack.c.bf16 %v120_v17, %v117_v16  ;;  %2285 = vmatpush3.bf16.msra.mxu0 %v2804_v20  ;;  %v174_v30 = vand.u32 4294901760, %v61_v19  ;;  %v2820_v31 = vsub.f32 %v56_v0, %v159_v3  ;;  %v2822_v32 = vsub.f32 %v57_v1, %v162_v4  ;;  %v65_v6 = vld [vmem:[#allocation5 + $0xc8] sm:$0xff]  ;;  %v48_v11 = vld [vmem:[#allocation5 + $0x40] sm:$0xff] }
  0x2d   :  { %2287 = vmatprep.subr.bf16.mxu0 %v2808_v22  ;;  %v123_v33 = vand.u32 4294901760, %v44_v23  ;;  %v126_v34 = vand.u32 4294901760, %v45_v24  ;;  %v3731_v35 = vand.u32 4294901760, %v2802_v15  ;;  %v3730_v36 = vand.u32 4294901760, %v2806_v21  ;;  %p2728_p5 = por %p2727_p4, %p2726_p3 }
  0x2e   :  { %v2827_v38 = vsub.f32 %v43_v13, %v120_v17  ;;  %v2829_v39 = vpack.c.bf16 %v174_v30, %v171_v29  ;;  %v2831_v40 = vsub.f32 %v60_v18, %v171_v29  ;;  %v3735_v41 = vand.u32 4294901760, %v2820_v31  ;;  %v49_v29 = vld [vmem:[#allocation5 + $0x48] sm:$0xff] }
  0x2f   :  { %v2834_v43 = vsub.f32 %v61_v19, %v174_v30  ;;  %v3733_v44 = vand.u32 4294901760, %v2822_v32  ;;  %v2837_v45 = vpack.c.bf16 %v126_v34, %v123_v33  ;;  %v2839_v46 = vsub.f32 %v44_v23, %v123_v33  ;;  %p2729_p6 = pnand %p2728_p5, %p2722_p2 }
  0x30   :  { %2289 = vmatpush3.bf16.msra.mxu0 %v2815_v27  ;;  %v338_v47 = vsub.f32 %v2820_v31, %v3735_v41  ;;  %v226_v48 = vsub.f32 %v2802_v15, %v3731_v35  ;;  %v233_v49 = vsub.f32 %v2806_v21, %v3730_v36  ;;  %v177_v50 = vand.u32 4294901760, %v62_v37  ;;  %v38_v41 = vld [vmem:[#allocation2] sm:$0xff] }
  0x31   :  { %2291 = vmatprep.subr.bf16.mxu0 %v2829_v39  ;;  %v345_v51 = vsub.f32 %v2822_v32, %v3733_v44  ;;  %v180_v52 = vand.u32 4294901760, %v63_v42  ;;  %v3728_v53 = vand.u32 4294901760, %v2811_v25  ;;  %v3726_v54 = vand.u32 4294901760, %v2813_v26 }
  0x32   :  { %v339_v57 = vand.u32 4294901760, %v338_v47  ;;  %v2857_v58 = vsub.f32 %v45_v24, %v126_v34  ;;  %v227_v59 = vand.u32 4294901760, %v226_v48  ;;  %v234_v60 = vand.u32 4294901760, %v233_v49 }
  0x33   :  { %v346_v61 = vand.u32 4294901760, %v345_v51  ;;  %v2859_v62 = vpack.c.bf16 %v180_v52, %v177_v50  ;;  %v2861_v63 = vsub.f32 %v62_v37, %v177_v50  ;;  %v352_v0 = vsub.f32 %v2811_v25, %v3728_v53 }
  0x34   :  { %2293 = vmatpush3.bf16.msra.mxu0 %v2837_v45  ;;  %v2316_v1 = vpack.c.bf16 %v234_v60, %v227_v59  ;;  %v359_v2 = vsub.f32 %v2813_v26, %v3726_v54  ;;  %v129_v3 = vand.u32 4294901760, %v46_v55  ;;  %v132_v4 = vand.u32 4294901760, %v47_v56  ;;  %v67_v59 = vld [vmem:[#allocation5 + $0xd8] sm:$0xff] }
  0x35   :  { %v2314_v7 = vpack.c.bf16 %v346_v61, %v339_v57  ;;  %2295 = vmatprep.subr.bf16.mxu0 %v2859_v62  ;;  %v353_v8 = vand.u32 4294901760, %v352_v0  ;;  %v3725_v9 = vand.u32 4294901760, %v2817_v28  ;;  %v3723_v10 = vand.u32 4294901760, %v2827_v38  ;;  %v66_v57 = vld [vmem:[#allocation5 + $0xd0] sm:$0xff]  ;;  %v71_v54 = vld [vmem:[#allocation5 + $0xf8] sm:$0xff] }
  0x36   :  { %v2873_v12 = vsub.f32 %v63_v42, %v180_v52  ;;  %v360_v13 = vand.u32 4294901760, %v359_v2  ;;  %v2875_v16 = vpack.c.bf16 %v132_v4, %v129_v3  ;;  %v2877_v17 = vsub.f32 %v46_v55, %v129_v3 }
  0x37   :  { %2315 = vmatprep.subr.bf16.mxu1 %v2314_v7  ;;  %v240_v18 = vsub.f32 %v2817_v28, %v3725_v9  ;;  %v247_v19 = vsub.f32 %v2827_v38, %v3723_v10  ;;  %v183_v23 = vand.u32 4294901760, %v64_v5  ;;  %v186_v24 = vand.u32 4294901760, %v65_v6  ;;  %v70_v9 = vld [vmem:[#allocation5 + $0xf0] sm:$0xff] }
  0x38   :  { %2317 = vmatpush3.bf16.msra.mxu1 %v2316_v1  ;;  %v2318_v30 = vpack.c.bf16 %v360_v13, %v353_v8  ;;  %2297 = vmatpush3.bf16.msra.mxu0 %v2875_v16  ;;  %v3721_v33 = vand.u32 4294901760, %v2831_v40  ;;  %v3720_v34 = vand.u32 4294901760, %v2834_v43  ;;  %v135_v37 = vand.u32 4294901760, %v48_v11  ;;  %v50_v1 = vld [vmem:[#allocation5 + $0x50] sm:$0xff] }
  0x39   :  { %v2888_v42 = vsub.f32 %v47_v56, %v132_v4  ;;  %v241_v47 = vand.u32 4294901760, %v240_v18  ;;  %v248_v48 = vand.u32 4294901760, %v247_v19  ;;  %v2890_v49 = vpack.c.bf16 %v186_v24, %v183_v23  ;;  %v51_v18 = vld [vmem:[#allocation5 + $0x58] sm:$0xff] }
  0x3a   :  { %2319 = vmatprep.subr.bf16.mxu1 %v2318_v30  ;;  %v2892_v50 = vsub.f32 %v64_v5, %v183_v23  ;;  %v366_v51 = vsub.f32 %v2831_v40, %v3721_v33  ;;  %v373_v52 = vsub.f32 %v2834_v43, %v3720_v34  ;;  %v138_v55 = vand.u32 4294901760, %v49_v29 }
  0x3b   :  { %v2320_v56 = vpack.c.bf16 %v248_v48, %v241_v47  ;;  %2299 = vmatprep.subr.bf16.mxu0 %v2890_v49  ;;  %v2901_v60 = vsub.f32 %v65_v6, %v186_v24  ;;  %v3718_v61 = vand.u32 4294901760, %v2839_v46  ;;  %v3716_v0 = vand.u32 4294901760, %v2857_v58 }
  0x3c   :  { %v367_v2 = vand.u32 4294901760, %v366_v51  ;;  %v374_v3 = vand.u32 4294901760, %v373_v52  ;;  %v2905_v4 = vpack.c.bf16 %v138_v55, %v135_v37  ;;  %v2907_v5 = vsub.f32 %v48_v11, %v135_v37 }
  0x3d   :  { %2321 = vmatpush3.bf16.msra.mxu1 %v2320_v56  ;;  %v254_v7 = vsub.f32 %v2839_v46, %v3718_v61  ;;  %v261_v6 = vsub.f32 %v2857_v58, %v3716_v0  ;;  %v189_v8 = vand.u32 4294901760, %v66_v57  ;;  %v192_v13 = vand.u32 4294901760, %v67_v59  ;;  %v69_v0 = vld [vmem:[#allocation5 + $0xe8] sm:$0xff] }
  0x3e   :  { %v2322_v19 = vpack.c.bf16 %v374_v3, %v367_v2  ;;  %2301 = vmatpush3.bf16.msra.mxu0 %v2905_v4  ;;  %v3717_v23 = vand.u32 4294901760, %v2861_v63  ;;  %v3719_v11 = vand.u32 4294901760, %v2873_v12  ;;  %v141_v24 = vand.u32 4294901760, %v50_v1  ;;  %v68_v3 = vld [vmem:[#allocation5 + $0xe0] sm:$0xff] }
  0x3f   :  { %v2918_v30 = vsub.f32 %v49_v29, %v138_v55  ;;  %v255_v37 = vand.u32 4294901760, %v254_v7  ;;  %v262_v47 = vand.u32 4294901760, %v261_v6  ;;  %v2920_v48 = vpack.c.bf16 %v192_v13, %v189_v8  ;;  %v52_v6 = vld [vmem:[#allocation5 + $0x60] sm:$0xff] }
  0x40   :  { %2323 = vmatprep.subr.bf16.mxu1 %v2322_v19  ;;  %v2922_v51 = vsub.f32 %v66_v57, %v189_v8  ;;  %v380_v52 = vsub.f32 %v2861_v63, %v3717_v23  ;;  %v387_v56 = vsub.f32 %v2873_v12, %v3719_v11  ;;  %v144_v2 = vand.u32 4294901760, %v51_v18  ;;  %v53_v11 = vld [vmem:[#allocation5 + $0x68] sm:$0xff] }
  0x41   :  { %v2324_v29 = vpack.c.bf16 %v262_v47, %v255_v37  ;;  %2303 = vmatprep.subr.bf16.mxu0 %v2920_v48  ;;  %v2931_v55 = vsub.f32 %v67_v59, %v192_v13  ;;  %v3722_v7 = vand.u32 4294901760, %v2877_v17  ;;  %v3724_v57 = vand.u32 4294901760, %v2888_v42 }
  0x42   :  { %v381_v8 = vand.u32 4294901760, %v380_v52  ;;  %v388_v19 = vand.u32 4294901760, %v387_v56  ;;  %v2935_v23 = vpack.c.bf16 %v144_v2, %v141_v24  ;;  %v2937_v61 = vsub.f32 %v50_v1, %v141_v24 }
  0x43   :  { %2325 = vmatpush3.bf16.msra.mxu1 %v2324_v29  ;;  %v268_v37 = vsub.f32 %v2877_v17, %v3722_v7  ;;  %v275_v59 = vsub.f32 %v2888_v42, %v3724_v57  ;;  %v195_v13 = vand.u32 4294901760, %v68_v3  ;;  %v198_v47 = vand.u32 4294901760, %v69_v0 }
  0x44   :  { %v2326_v34 = vpack.c.bf16 %v388_v19, %v381_v8  ;;  %2305 = vmatpush3.bf16.msra.mxu0 %v2935_v23  ;;  %v3727_v52 = vand.u32 4294901760, %v2892_v50  ;;  %v3729_v1 = vand.u32 4294901760, %v2901_v60  ;;  %v147_v24 = vand.u32 4294901760, %v52_v6 }
  0x45   :  { %v2948_v56 = vsub.f32 %v51_v18, %v144_v2  ;;  %v269_v29 = vand.u32 4294901760, %v268_v37  ;;  %v276_v33 = vand.u32 4294901760, %v275_v59  ;;  %v2950_v7 = vpack.c.bf16 %v198_v47, %v195_v13  ;;  %v54_v37 = vld [vmem:[#allocation5 + $0x70] sm:$0xff] }
  0x46   :  { %2327 = vmatprep.subr.bf16.mxu1 %v2326_v34  ;;  %v2952_v10 = vsub.f32 %v68_v3, %v195_v13  ;;  %v394_v8 = vsub.f32 %v2892_v50, %v3727_v52  ;;  %v401_v19 = vsub.f32 %v2901_v60, %v3729_v1  ;;  %v150_v57 = vand.u32 4294901760, %v53_v11  ;;  %v55_v1 = vld [vmem:[#allocation5 + $0x78] sm:$0xff] }
  0x47   :  { %3804 = vst [vmem:[#allocation11_spill] sm:$0xff] %v2950_v7  ;;  %v2328_v18 = vpack.c.bf16 %v276_v33, %v269_v29  ;;  %2307 = vmatprep.subr.bf16.mxu0 %v2950_v7  ;;  %v2961_v2 = vsub.f32 %v69_v0, %v198_v47  ;;  %v3732_v34 = vand.u32 4294901760, %v2907_v5  ;;  %v3734_v3 = vand.u32 4294901760, %v2918_v30 }
  0x48   :  { %v395_v59 = vand.u32 4294901760, %v394_v8  ;;  %v402_v13 = vand.u32 4294901760, %v401_v19  ;;  %v2965_v52 = vpack.c.bf16 %v150_v57, %v147_v24  ;;  %v2967_v53 = vsub.f32 %v52_v6, %v147_v24 }
  0x49   :  { %2329 = vmatpush3.bf16.msra.mxu1 %v2328_v18  ;;  %v282_v33 = vsub.f32 %v2907_v5, %v3732_v34  ;;  %v289_v0 = vsub.f32 %v2918_v30, %v3734_v3  ;;  %v201_v47 = vand.u32 4294901760, %v70_v9  ;;  %v204_v29 = vand.u32 4294901760, %v71_v54 }
  0x4a   :  { %3805 = vst [vmem:[#allocation12_spill] sm:$0xff] %v2965_v52  ;;  %v2330_v36 = vpack.c.bf16 %v402_v13, %v395_v59  ;;  %2309 = vmatpush3.bf16.msra.mxu0 %v2965_v52  ;;  %v3740_v8 = vand.u32 4294901760, %v2922_v51  ;;  %v3738_v6 = vand.u32 4294901760, %v2931_v55  ;;  %v153_v24 = vand.u32 4294901760, %v54_v37 }
  0x4b   :  { %v2978_v19 = vsub.f32 %v53_v11, %v150_v57  ;;  %v283_v18 = vand.u32 4294901760, %v282_v33  ;;  %v290_v35 = vand.u32 4294901760, %v289_v0  ;;  %v2980_v34 = vpack.c.bf16 %v204_v29, %v201_v47 }
  0x4c   :  { %2331 = vmatprep.subr.bf16.mxu1 %v2330_v36  ;;  %v2982_v44 = vsub.f32 %v70_v9, %v201_v47  ;;  %v408_v59 = vsub.f32 %v2922_v51, %v3740_v8  ;;  %v415_v13 = vsub.f32 %v2931_v55, %v3738_v6  ;;  %v156_v3 = vand.u32 4294901760, %v55_v1 }
  0x4d   :  { %3806 = vst [vmem:[#allocation13_spill] sm:$0xff] %v2980_v34  ;;  %v2332_v52 = vpack.c.bf16 %v290_v35, %v283_v18  ;;  %2311 = vmatprep.subr.bf16.mxu0 %v2980_v34  ;;  %v2991_v11 = vsub.f32 %v71_v54, %v204_v29  ;;  %v3739_v57 = vand.u32 4294901760, %v2937_v61  ;;  %v3741_v36 = vand.u32 4294901760, %v2948_v56 }
  0x4e   :  { %v409_v9 = vand.u32 4294901760, %v408_v59  ;;  %v416_v33 = vand.u32 4294901760, %v415_v13  ;;  %v2995_v0 = vpack.c.bf16 %v156_v3, %v153_v24  ;;  %v2997_v47 = vsub.f32 %v54_v37, %v153_v24 }
  0x4f   :  { %2333 = vmatpush3.bf16.msra.mxu1 %v2332_v52  ;;  %v296_v6 = vsub.f32 %v2937_v61, %v3739_v57  ;;  %v303_v35 = vsub.f32 %v2948_v56, %v3741_v36  ;;  %v106_v54 = vcombine.high %v38_v41, %v38_v41  ;;  %v3005_v29 = vand.u32 4294901760, %v38_v41 }
  0x50   :  { %3807 = vst [vmem:[#allocation14_spill] sm:$0xff] %v2995_v0  ;;  %v2334_v18 = vpack.c.bf16 %v416_v33, %v409_v9  ;;  %2313 = vmatpush3.bf16.msra.mxu0 %v2995_v0  ;;  %v3744_v59 = vand.u32 4294901760, %v2952_v10  ;;  %v3747_v37 = vand.u32 4294901760, %v2961_v2  ;;  %v2346_v52 = vpack.c.bf16 %v2822_v32, %v2820_v31 }
  0x51   :  { %v297_v24 = vand.u32 4294901760, %v296_v6  ;;  %v304_v13 = vand.u32 4294901760, %v303_v35  ;;  %v3012_v57 = vand.u32 4294901760, %v106_v54  ;;  %v3015_v8 = vsub.f32 %v38_v41, %v3005_v29 }
  0x52   :  { %2335 = vmatprep.subr.bf16.mxu1 %v2334_v18  ;;  %v422_v9 = vsub.f32 %v2952_v10, %v3744_v59  ;;  %v429_v33 = vsub.f32 %v2961_v2, %v3747_v37  ;;  %2347 = vmatprep.subr.bf16.mxu0 %v2346_v52  ;;  %v3748_v36 = vand.u32 4294901760, %v2967_v53  ;;  %v3749_v6 = vand.u32 4294901760, %v2978_v19 }
  0x53   :  { %3808 = vst [vmem:[#allocation15_spill] sm:$0xff] %v3012_v57  ;;  %3809 = vst [vmem:[#allocation16_spill] sm:$0xff] %v3015_v8  ;;  %v3025_v35 = vsub.f32 %v55_v1, %v156_v3  ;;  %v2336_v0 = vpack.c.bf16 %v304_v13, %v297_v24  ;;  %v3028_v41 = vsub.f32 %v106_v54, %v3012_v57  ;;  %v3752_v18 = vand.u32 4294901760, %v3015_v8 }
  0x54   :  { %447 = vmatprep.mubr.f32.mxu1 %v3012_v57  ;;  %v423_v59 = vand.u32 4294901760, %v422_v9  ;;  %v430_v34 = vand.u32 4294901760, %v429_v33  ;;  %v310_v52 = vsub.f32 %v2967_v53, %v3748_v36  ;;  %v317_v37 = vsub.f32 %v2978_v19, %v3749_v6 }
  0x55   :  { %2337 = vmatpush3.bf16.msra.mxu1 %v2336_v0  ;;  %v208_v1 = vand.u32 4294901760, %v3028_v41  ;;  %v215_v3 = vsub.f32 %v3015_v8, %v3752_v18  ;;  %v3757_v54 = vand.u32 4294901760, %v2982_v44  ;;  %v442_v24 = vand.u32 4294901760, %v2991_v11 }
  0x56   :  { %v2338_v13 = vpack.c.bf16 %v430_v34, %v423_v59  ;;  %v311_v9 = vand.u32 4294901760, %v310_v52  ;;  %v318_v33 = vand.u32 4294901760, %v317_v37  ;;  %v3758_v8 = vand.u32 4294901760, %v2997_v47 }
  0x57   :  { %v209_v36 = vsub.f32 %v3028_v41, %v208_v1  ;;  %v436_v6 = vsub.f32 %v2982_v44, %v3757_v54  ;;  %v443_v0 = vsub.f32 %v2991_v11, %v442_v24  ;;  %v216_v57 = vand.u32 4294901760, %v215_v3 }
  0x58   :  { %2339 = vmatprep.subr.bf16.mxu1 %v2338_v13  ;;  %v2340_v18 = vpack.c.bf16 %v318_v33, %v311_v9  ;;  %v330_v7 = vand.u32 4294901760, %v3025_v35  ;;  %v2348_v59 = vpack.c.bf16 %v2806_v21, %v2802_v15  ;;  %v2350_v54 = vpack.c.bf16 %v2813_v26, %v2811_v25 }
  0x59   :  { %v210_v34 = vand.u32 4294901760, %v209_v36  ;;  %v437_v37 = vand.u32 4294901760, %v436_v6  ;;  %v444_v52 = vand.u32 4294901760, %v443_v0  ;;  %v324_v13 = vsub.f32 %v2997_v47, %v3758_v8 }
  0x5a   :  { %2341 = vmatpush3.bf16.msra.mxu1 %v2340_v18  ;;  %v331_v3 = vsub.f32 %v3025_v35, %v330_v7  ;;  %v2352_v6 = vpack.c.bf16 %v2827_v38, %v2817_v28  ;;  %v2354_v18 = vpack.c.bf16 %v2834_v43, %v2831_v40  ;;  %v2356_v8 = vpack.c.bf16 %v2857_v58, %v2839_v46 }
  0x5b   :  { %211 = vmatprep.mubr.f32.mxu0 %v210_v34  ;;  %v2342_v9 = vpack.c.bf16 %v444_v52, %v437_v37  ;;  %v325_v36 = vand.u32 4294901760, %v324_v13  ;;  %v3810_v34 = vand.u32 4294901760, %v2820_v31  ;;  %v3813_v52 = vand.u32 4294901760, %v2806_v21 }
  0x5c   :  { %217 = vmatmul.mubr.f32.vlgmr.msra.gmra.mrb[0].mxu0 %v216_v57  ;;  %v332_v33 = vand.u32 4294901760, %v331_v3  ;;  %v3811_v57 = vand.u32 4294901760, %v2822_v32  ;;  %v3814_v3 = vand.u32 4294901760, %v2811_v25  ;;  %v3818_v31 = vand.u32 4294901760, %v2831_v40 }
  0x5d   :  { %2349 = vmatpush3.bf16.msra.mxu0 %v2348_v59  ;;  %2343 = vmatprep.subr.bf16.mxu1 %v2342_v9  ;;  %v3812_v59 = vand.u32 4294901760, %v2802_v15  ;;  %v3819_v32 = vand.u32 4294901760, %v2834_v43  ;;  %v3820_v15 = vand.u32 4294901760, %v2839_v46  ;;  %v3821_v21 = vand.u32 4294901760, %v2857_v58 }
  0x5e   :  { %2351 = vmatprep.subr.bf16.mxu0 %v2350_v54  ;;  %v2344_v0 = vpack.c.bf16 %v332_v33, %v325_v36  ;;  %584 = vmatprep.mubr.f32.mxu0 %v3028_v41  ;;  %v2410_v37 = vpack.c.bf16 %v3811_v57, %v3810_v34  ;;  %v3815_v54 = vand.u32 4294901760, %v2813_v26  ;;  %v3816_v36 = vand.u32 4294901760, %v2817_v28 }
  0x5f   :  { %v2412_v13 = vpack.c.bf16 %v3813_v52, %v3812_v59  ;;  %v3817_v33 = vand.u32 4294901760, %v2827_v38  ;;  %v3092_v34 = vpack.c.bf16 %v3819_v32, %v3818_v31  ;;  %v3098_v25 = vpack.c.bf16 %v3821_v21, %v3820_v15 }
  0x60   :  { %v2414_v9 = vpack.c.bf16 %v3815_v54, %v3814_v3  ;;  %2345 = vmatpush3.bf16.msra.mxu1 %v2344_v0  ;;  %v3822_v26 = vand.u32 4294901760, %v2861_v63  ;;  %v3823_v28 = vand.u32 4294901760, %v2873_v12  ;;  %v3824_v57 = vand.u32 4294901760, %v2877_v17 }
  0x61   :  { %v3086_v41 = vpack.c.bf16 %v3817_v33, %v3816_v36  ;;  %v3825_v40 = vand.u32 4294901760, %v2888_v42  ;;  %v3826_v0 = vand.u32 4294901760, %v2892_v50  ;;  %v3827_v46 = vand.u32 4294901760, %v2901_v60  ;;  %2353 = vmatpush3.bf16.msra.mxu0 %v2352_v6  ;;  %2379 = vmatprep.subr.bf16.mxu1 %v2800_v14 }
  0x62   :  { %v3104_v38 = vpack.c.bf16 %v3823_v28, %v3822_v26  ;;  %v3828_v58 = vand.u32 4294901760, %v2907_v5  ;;  %v3829_v52 = vand.u32 4294901760, %v2918_v30  ;;  %v3830_v54 = vand.u32 4294901760, %v2922_v51  ;;  %2355 = vmatprep.subr.bf16.mxu0 %v2354_v18 }
  0x63   :  { %v3110_v43 = vpack.c.bf16 %v3825_v40, %v3824_v57  ;;  %v3116_v59 = vpack.c.bf16 %v3827_v46, %v3826_v0  ;;  %v3831_v36 = vand.u32 4294901760, %v2931_v55  ;;  %v3832_v31 = vand.u32 4294901760, %v2937_v61  ;;  %449 = vmatmul.mubr.f32.vlgmr.msra.gmra.mrb[0].mxu1 %v3005_v29  ;;  %v3840_v0 = vld [vmem:[#allocation15_spill] sm:$0xff] }
  0x64   :  { %v3123_v3 = vpack.c.bf16 %v3829_v52, %v3828_v58  ;;  %v3833_v32 = vand.u32 4294901760, %v2948_v56  ;;  %v2358_v6 = vpack.c.bf16 %v2873_v12, %v2861_v63  ;;  %v3834_v21 = vand.u32 4294901760, %v2967_v53  ;;  %2381 = vmatpush3.bf16.msra.mxu1 %v2804_v20  ;;  %691 = vmatprep.mubr.f32.mxu1 %v208_v1  ;;  %v3839_v1 = vld [vmem:[#allocation13_spill] sm:$0xff]  ;;  %v3841_v52 = vld [vmem:[#allocation14_spill] sm:$0xff] }
  0x65   :  { %v3129_v33 = vpack.c.bf16 %v3831_v36, %v3830_v54  ;;  %v3835_v26 = vand.u32 4294901760, %v2978_v19  ;;  %2357 = vmatpush3.bf16.msra.mxu0 %v2356_v8  ;;  %2383 = vmatprep.subr.bf16.mxu1 %v2808_v22  ;;  %v2360_v18 = vpack.c.bf16 %v2888_v42, %v2877_v17  ;;  %v2362_v63 = vpack.c.bf16 %v2901_v60, %v2892_v50 }
  0x66   :  { %v3135_v15 = vpack.c.bf16 %v3833_v32, %v3832_v31  ;;  %2359 = vmatprep.subr.bf16.mxu0 %v2358_v6  ;;  %v2364_v12 = vpack.c.bf16 %v2918_v30, %v2907_v5  ;;  %v2366_v8 = vpack.c.bf16 %v2931_v55, %v2922_v51  ;;  %v2368_v17 = vpack.c.bf16 %v2948_v56, %v2937_v61  ;;  %v3836_v5 = vld [vmem:[#allocation11_spill] sm:$0xff]  ;;  %v3837_v51 = vld [vmem:[#allocation16_spill] sm:$0xff] }
  0x67   :  { %v3143_v28 = vpack.c.bf16 %v3835_v26, %v3834_v21  ;;  %v2370_v42 = vpack.c.bf16 %v2961_v2, %v2952_v10  ;;  %v2372_v50 = vpack.c.bf16 %v2978_v19, %v2967_v53  ;;  %v2374_v60 = vpack.c.bf16 %v2991_v11, %v2982_v44  ;;  %v88_v53 = vld [vmem:[#allocation5 + $0x180] sm:$0xff]  ;;  %v89_v30 = vld [vmem:[#allocation5 + $0x188] sm:$0xff]  ;;  %v74_v21 = vld [vmem:[#allocation5 + $0x110] sm:$0xff] }
  0x68   :  { %2385 = vmatpush3.bf16.msra.mxu1 %v2815_v27  ;;  %v2376_v61 = vpack.c.bf16 %v3025_v35, %v2997_v47  ;;  %v3838_v55 = vld [vmem:[#allocation12_spill] sm:$0xff]  ;;  %v72_v56 = vld [vmem:[#allocation5 + $0x100] sm:$0xff]  ;;  %v1021_v57 = vand.u32 4294901760, %v88_v53  ;;  %v1024_v40 = vand.u32 4294901760, %v89_v30  ;;  %v75_v26 = vld [vmem:[#allocation5 + $0x118] sm:$0xff]  ;;  %v979_v11 = vand.u32 4294901760, %v74_v21 }
  0x69   :  { %2361 = vmatpush3.bf16.msra.mxu0 %v2360_v18  ;;  %2387 = vmatprep.subr.bf16.mxu1 %v2829_v39  ;;  %v73_v19 = vld [vmem:[#allocation5 + $0x108] sm:$0xff]  ;;  %v973_v46 = vand.u32 4294901760, %v72_v56 }
  0x6a   :  { %2363 = vmatprep.subr.bf16.mxu0 %v2362_v63  ;;  %v976_v58 = vand.u32 4294901760, %v73_v19  ;;  %v3183_v54 = vsub.f32 %v88_v53, %v1021_v57  ;;  %v3185_v36 = vsub.f32 %v89_v30, %v1024_v40 }
  0x6b   :  { %v3190_v31 = vsub.f32 %v72_v56, %v973_v46 }
  0x6c   :  { %2389 = vmatpush3.bf16.msra.mxu1 %v2837_v45  ;;  %v3192_v32 = vsub.f32 %v73_v19, %v976_v58 }
  0x6d   :  { %2365 = vmatpush3.bf16.msra.mxu0 %v2364_v12  ;;  %2391 = vmatprep.subr.bf16.mxu1 %v2859_v62  ;;  %v3845_v12 = vand.u32 4294901760, %v2982_v44  ;;  %v3223_v44 = vpack.c.bf16 %v976_v58, %v973_v46  ;;  %v3247_v46 = vsub.f32 %v74_v21, %v979_v11 }
  0x6e   :  { %2367 = vmatprep.subr.bf16.mxu0 %v2366_v8 }
  0x6f   :  { %v3208_v8 = vpack.c.bf16 %v442_v24, %v3845_v12  ;;  %3847 = vst [vmem:[#allocation11_spill] sm:$0xff] %v3223_v44  ;;  %v982_v24 = vand.u32 4294901760, %v75_v26 }
  0x70   :  { %2393 = vmatpush3.bf16.msra.mxu1 %v2875_v16 }
  0x71   :  { %2369 = vmatpush3.bf16.msra.mxu0 %v2368_v17  ;;  %2395 = vmatprep.subr.bf16.mxu1 %v2890_v49  ;;  %v3768_v17 = vand.u32 4294901760, %v3183_v54 }
  0x72   :  { %2371 = vmatprep.subr.bf16.mxu0 %v2370_v42  ;;  %v3766_v42 = vand.u32 4294901760, %v3185_v36 }
  0x73   :  { %v1200_v56 = vsub.f32 %v3183_v54, %v3768_v17 }
  0x74   :  { %2397 = vmatpush3.bf16.msra.mxu1 %v2905_v4 }
  0x75   :  { %2373 = vmatpush3.bf16.msra.mxu0 %v2372_v50  ;;  %2399 = vmatprep.subr.bf16.mxu1 %v2920_v48  ;;  %v77_v50 = vld [vmem:[#allocation5 + $0x128] sm:$0xff] }
  0x76   :  { %2375 = vmatprep.subr.bf16.mxu0 %v2374_v60  ;;  %v3764_v60 = vand.u32 4294901760, %v3190_v31 }
  0x78   :  { %2401 = vmatpush3.bf16.msra.mxu1 %v2935_v23 }
  0x79   :  { %2377 = vmatpush3.bf16.msra.mxu0 %v2376_v61  ;;  %2403 = vmatprep.subr.bf16.mxu1 %v3836_v5  ;;  %v3762_v61 = vand.u32 4294901760, %v3192_v32 }
  0x7a   :  { %2411 = vmatprep.subr.bf16.mxu0 %v2410_v37  ;;  %v90_v37 = vld [vmem:[#allocation5 + $0x190] sm:$0xff] }
  0x7b   :  { %v1027_v6 = vand.u32 4294901760, %v90_v37 }
  0x7c   :  { %587 = vmatmul.mubr.f32.vlgmr.msra.gmra.mrb[2].mxu0 %v3837_v51  ;;  %2405 = vmatpush3.bf16.msra.mxu1 %v3838_v55 }
  0x7d   :  { %2413 = vmatpush3.bf16.msra.mxu0 %v2412_v13  ;;  %2407 = vmatprep.subr.bf16.mxu1 %v3839_v1  ;;  %v91_v13 = vld [vmem:[#allocation5 + $0x198] sm:$0xff]  ;;  %v3225_v35 = vsub.f32 %v90_v37, %v1027_v6 }
  0x7e   :  { %2415 = vmatprep.subr.bf16.mxu0 %v2414_v9  ;;  %861 = vmatprep.mubr.f32.mxu0 %v3840_v0  ;;  %v3842_v9 = vand.u32 4294901760, %v3837_v51  ;;  %v1030_v63 = vand.u32 4294901760, %v91_v13 }
  0x80   :  { %2409 = vmatpush3.bf16.msra.mxu1 %v3841_v52  ;;  %v3230_v53 = vpack.c.bf16 %v1030_v63, %v1027_v6 }
  0x81   :  { %2417 = vmatpush3.bf16.msra.mxu0 %v3086_v41  ;;  %2443 = vmatprep.subr.bf16.mxu1 %v2800_v14  ;;  %v3843_v14 = vand.u32 4294901760, %v2952_v10  ;;  %v3844_v41 = vand.u32 4294901760, %v2961_v2  ;;  %v93_v2 = vld [vmem:[#allocation5 + $0x1a8] sm:$0xff] }
  0x82   :  { %2419 = vmatprep.subr.bf16.mxu0 %v3092_v34  ;;  %v92_v34 = vld [vmem:[#allocation5 + $0x1a0] sm:$0xff]  ;;  %v1036_v30 = vand.u32 4294901760, %v93_v2 }
  0x83   :  { %695 = vmatmul.mubr.f32.vlgmr.msra.gmra.mrb[2].mxu1 %v3842_v9  ;;  %v3199_v18 = vpack.c.bf16 %v3844_v41, %v3843_v14  ;;  %v1095_v9 = vsub.f32 %v3192_v32, %v3762_v61  ;;  %v1201_v41 = vand.u32 4294901760, %v1200_v56  ;;  %v81_v61 = vld [vmem:[#allocation5 + $0x148] sm:$0xff] }
  0x84   :  { %2445 = vmatpush3.bf16.msra.mxu1 %v2804_v20  ;;  %965 = vmatprep.mubr.f32.mxu1 %v3840_v0  ;;  %v3846_v20 = vand.u32 4294901760, %v2997_v47  ;;  %v76_v47 = vld [vmem:[#allocation5 + $0x120] sm:$0xff]  ;;  %v3245_v0 = vpack.c.bf16 %v982_v24, %v979_v11  ;;  %v3265_v21 = vsub.f32 %v93_v2, %v1036_v30  ;;  %v79_v11 = vld [vmem:[#allocation5 + $0x138] sm:$0xff] }
  0x85   :  { %2421 = vmatpush3.bf16.msra.mxu0 %v3098_v25  ;;  %2447 = vmatprep.subr.bf16.mxu1 %v2808_v22  ;;  %v3218_v25 = vld [vmem:[#allocation2 + $0x8] sm:$0xff]  ;;  %v3221_v22 = vpack.c.bf16 %v1024_v40, %v1021_v57  ;;  %v985_v19 = vand.u32 4294901760, %v76_v47  ;;  %v988_v57 = vand.u32 4294901760, %v77_v50  ;;  %v94_v40 = vld [vmem:[#allocation5 + $0x1b0] sm:$0xff] }
  0x86   :  { %v3214_v10 = vpack.c.bf16 %v330_v7, %v3846_v20  ;;  %2423 = vmatprep.subr.bf16.mxu0 %v3104_v38  ;;  %v1033_v7 = vand.u32 4294901760, %v92_v34  ;;  %v3232_v38 = vsub.f32 %v91_v13, %v1030_v63  ;;  %v107_v51 = vcombine.high %v3218_v25, %v3218_v25  ;;  %3848 = vst [vmem:[#allocation16_spill] sm:$0xff] %v3245_v0  ;;  %v78_v20 = vld [vmem:[#allocation5 + $0x130] sm:$0xff] }
  0x87   :  { %v1088_v13 = vsub.f32 %v3190_v31, %v3764_v60  ;;  %v3275_v2 = vsub.f32 %v77_v50, %v988_v57  ;;  %v991_v50 = vand.u32 4294901760, %v78_v20 }
  0x88   :  { %2449 = vmatpush3.bf16.msra.mxu1 %v2815_v27  ;;  %v1207_v27 = vsub.f32 %v3185_v36, %v3766_v42  ;;  %v3251_v58 = vand.u32 4294901760, %v107_v51  ;;  %v3253_v37 = vsub.f32 %v92_v34, %v1033_v7  ;;  %v3263_v6 = vpack.c.bf16 %v1036_v30, %v1033_v7 }
  0x89   :  { %2425 = vmatpush3.bf16.msra.mxu0 %v3110_v43  ;;  %2451 = vmatprep.subr.bf16.mxu1 %v2829_v39  ;;  %v3249_v43 = vsub.f32 %v75_v26, %v982_v24  ;;  %v95_v39 = vld [vmem:[#allocation5 + $0x1b8] sm:$0xff]  ;;  %v1039_v26 = vand.u32 4294901760, %v94_v40  ;;  %v3759_v14 = vand.u32 4294901760, %v3232_v38  ;;  %v3270_v34 = vpack.c.bf16 %v988_v57, %v985_v19 }
  0x8a   :  { %2427 = vmatprep.subr.bf16.mxu0 %v3116_v59  ;;  %3849 = vst [vmem:[#allocation12_spill] sm:$0xff] %v3251_v58  ;;  %v3761_v59 = vand.u32 4294901760, %v3225_v35  ;;  %3850 = vst [vmem:[#allocation13_spill] sm:$0xff] %v3263_v6  ;;  %v1208_v63 = vand.u32 4294901760, %v1207_v27  ;;  %v1042_v12 = vand.u32 4294901760, %v95_v39  ;;  %v3760_v24 = vand.u32 4294901760, %v3247_v46 }
  0x8b   :  { %3851 = vst [vmem:[#allocation15_spill] sm:$0xff] %v3270_v34  ;;  %v3279_v7 = vsub.f32 %v107_v51, %v3251_v58  ;;  %v3763_v56 = vand.u32 4294901760, %v3249_v43  ;;  %v994_v27 = vand.u32 4294901760, %v79_v11  ;;  %v96_v51 = vld [vmem:[#allocation5 + $0x1c0] sm:$0xff] }
  0x8c   :  { %2453 = vmatpush3.bf16.msra.mxu1 %v2837_v45  ;;  %v3273_v45 = vsub.f32 %v76_v47, %v985_v19  ;;  %v1214_v30 = vsub.f32 %v3225_v35, %v3761_v59  ;;  %v1221_v47 = vsub.f32 %v3232_v38, %v3759_v14  ;;  %v3293_v19 = vpack.c.bf16 %v1208_v63, %v1201_v41 }
  0x8d   :  { %2429 = vmatpush3.bf16.msra.mxu0 %v3123_v3  ;;  %2455 = vmatprep.subr.bf16.mxu1 %v2859_v62  ;;  %v1089_v3 = vand.u32 4294901760, %v1088_v13  ;;  %v1096_v62 = vand.u32 4294901760, %v1095_v9  ;;  %v3295_v57 = vpack.c.bf16 %v1042_v12, %v1039_v26  ;;  %v3297_v13 = vsub.f32 %v95_v39, %v1042_v12 }
  0x8e   :  { %2431 = vmatprep.subr.bf16.mxu0 %v3129_v33  ;;  %v3286_v33 = vsub.f32 %v94_v40, %v1039_v26  ;;  %v1102_v40 = vsub.f32 %v3247_v46, %v3760_v24  ;;  %v3765_v9 = vand.u32 4294901760, %v3253_v37  ;;  %v3767_v14 = vand.u32 4294901760, %v3265_v21 }
  0x8f   :  { %3852 = vst [vmem:[#allocation14_spill] sm:$0xff] %v3295_v57  ;;  %3853 = vst [vmem:[#allocation17_spill] sm:$0xff] %v3297_v13  ;;  %v3306_v41 = vpack.c.bf16 %v1096_v62, %v1089_v3  ;;  %v1215_v26 = vand.u32 4294901760, %v1214_v30  ;;  %v1109_v39 = vsub.f32 %v3249_v43, %v3763_v56  ;;  %v1045_v63 = vand.u32 4294901760, %v96_v51 }
  0x90   :  { %2457 = vmatpush3.bf16.msra.mxu1 %v2875_v16  ;;  %v97_v16 = vld [vmem:[#allocation5 + $0x1c8] sm:$0xff]  ;;  %v3312_v12 = vpack.c.bf16 %v994_v27, %v991_v50  ;;  %v3314_v24 = vsub.f32 %v78_v20, %v991_v50  ;;  %v3318_v3 = vsub.f32 %v79_v11, %v994_v27  ;;  %v3769_v30 = vand.u32 4294901760, %v3273_v45  ;;  %v99_v27 = vld [vmem:[#allocation5 + $0x1d8] sm:$0xff] }
  0x91   :  { %2433 = vmatpush3.bf16.msra.mxu0 %v3135_v15  ;;  %2459 = vmatprep.subr.bf16.mxu1 %v2890_v49  ;;  %v80_v15 = vld [vmem:[#allocation5 + $0x140] sm:$0xff]  ;;  %v3773_v49 = vand.u32 4294901760, %v3279_v7  ;;  %v1048_v59 = vand.u32 4294901760, %v97_v16  ;;  %v3770_v56 = vand.u32 4294901760, %v3275_v2  ;;  %v1228_v20 = vsub.f32 %v3253_v37, %v3765_v9 }
  0x92   :  { %2435 = vmatprep.subr.bf16.mxu0 %v3199_v18  ;;  %v1222_v18 = vand.u32 4294901760, %v1221_v47  ;;  %3854 = vst [vmem:[#allocation18_spill] sm:$0xff] %v3312_v12  ;;  %v997_v62 = vand.u32 4294901760, %v80_v15  ;;  %v98_v47 = vld [vmem:[#allocation5 + $0x1d0] sm:$0xff]  ;;  %v1110_v11 = vand.u32 4294901760, %v1109_v39  ;;  %v1000_v50 = vand.u32 4294901760, %v81_v61 }
  0x93   :  { %v3771_v60 = vand.u32 4294901760, %v3286_v33  ;;  %v3337_v9 = vpack.c.bf16 %v1048_v59, %v1045_v63  ;;  %v3339_v42 = vsub.f32 %v96_v51, %v1045_v63  ;;  %v1116_v17 = vsub.f32 %v3273_v45, %v3769_v30 }
  0x94   :  { %2461 = vmatpush3.bf16.msra.mxu1 %v2905_v4  ;;  %v1103_v4 = vand.u32 4294901760, %v1102_v40  ;;  %v3335_v40 = vpack.c.bf16 %v1222_v18, %v1215_v26  ;;  %v3345_v39 = vsub.f32 %v80_v15, %v997_v62  ;;  %v1051_v26 = vand.u32 4294901760, %v98_v47  ;;  %v82_v18 = vld [vmem:[#allocation5 + $0x150] sm:$0xff] }
  0x95   :  { %2437 = vmatpush3.bf16.msra.mxu0 %v3143_v28  ;;  %2463 = vmatprep.subr.bf16.mxu1 %v2920_v48  ;;  %v1235_v28 = vsub.f32 %v3265_v21, %v3767_v14  ;;  %v1071_v48 = vsub.f32 %v3279_v7, %v3773_v49  ;;  %v3341_v14 = vsub.f32 %v97_v16, %v1048_v59  ;;  %v1229_v59 = vand.u32 4294901760, %v1228_v20  ;;  %v3374_v49 = vld [vmem:[#allocation5 + $0x1e8] sm:$0xff] }
  0x96   :  { %2439 = vmatprep.subr.bf16.mxu0 %v3208_v8  ;;  %v3772_v8 = vand.u32 4294901760, %v3297_v13  ;;  %3855 = vst [vmem:[#allocation19_spill] sm:$0xff] %v3345_v39  ;;  %v1054_v16 = vand.u32 4294901760, %v99_v27  ;;  %v3356_v15 = vpack.c.bf16 %v1000_v50, %v997_v62  ;;  %v1242_v30 = vsub.f32 %v3286_v33, %v3771_v60 }
  0x97   :  { %v1236_v51 = vand.u32 4294901760, %v1235_v28  ;;  %v1072_v63 = vand.u32 4294901760, %v1071_v48  ;;  %v3366_v20 = vsub.f32 %v81_v61, %v1000_v50  ;;  %v1003_v28 = vand.u32 4294901760, %v82_v18  ;;  %v3370_v48 = vld [vmem:[#allocation5 + $0x1e0] sm:$0xff] }
  0x98   :  { %2465 = vmatpush3.bf16.msra.mxu1 %v2935_v23  ;;  %v1123_v23 = vsub.f32 %v3275_v2, %v3770_v56  ;;  %3856 = vst [vmem:[#allocation20_spill] sm:$0xff] %v3356_v15  ;;  %v1249_v56 = vsub.f32 %v3297_v13, %v3772_v8  ;;  %v3378_v50 = vpack.c.bf16 %v1054_v16, %v1051_v26  ;;  %v3778_v62 = vand.u32 4294901760, %v3341_v14  ;;  %v3383_v13 = vld [vmem:[#allocation5 + $0x160] sm:$0xff] }
  0x99   :  { %2441 = vmatpush3.bf16.msra.mxu0 %v3214_v10  ;;  %2467 = vmatprep.subr.bf16.mxu1 %v3836_v5  ;;  %v83_v10 = vld [vmem:[#allocation5 + $0x158] sm:$0xff]  ;;  %v3354_v5 = vpack.c.bf16 %v1110_v11, %v1103_v4  ;;  %3857 = vst [vmem:[#allocation21_spill] sm:$0xff] %v3366_v20  ;;  %v1117_v11 = vand.u32 4294901760, %v1116_v17  ;;  %v2514_v61 = vpack.c.bf16 %v1236_v51, %v1229_v59  ;;  %v1243_v17 = vand.u32 4294901760, %v1242_v30 }
  0x9a   :  { %2475 = vmatprep.subr.bf16.mxu0 %v3221_v22  ;;  %v1124_v60 = vand.u32 4294901760, %v1123_v23  ;;  %v1006_v8 = vand.u32 4294901760, %v83_v10  ;;  %3858 = vst [vmem:[#allocation22_spill] sm:$0xff] %v3378_v50  ;;  %v3380_v4 = vsub.f32 %v98_v47, %v1051_v26  ;;  %v1250_v23 = vand.u32 4294901760, %v1249_v56 }
  0x9b   :  { %v3861_v59 = vand.u32 4294901760, %v3314_v24  ;;  %v3862_v26 = vand.u32 4294901760, %v3318_v3 }
  0x9c   :  { %863 = vmatmul.mubr.f32.vlgmr.msra.gmra.mrb[4].mxu0 %v3005_v29  ;;  %2469 = vmatpush3.bf16.msra.mxu1 %v3838_v55  ;;  %3859 = vst [vmem:[#allocation23_spill] sm:$0xff] %v3380_v4  ;;  %v3389_v55 = vsub.f32 %v82_v18, %v1003_v28  ;;  %v2516_v56 = vpack.c.bf16 %v1124_v60, %v1117_v11  ;;  %v3405_v18 = vld [vmem:[#allocation5 + $0x168] sm:$0xff] }
  0x9d   :  { %2477 = vmatpush3.bf16.msra.mxu0 %v3223_v44  ;;  %2471 = vmatprep.subr.bf16.mxu1 %v3839_v1  ;;  %v3385_v1 = vsub.f32 %v99_v27, %v1054_v16  ;;  %v3781_v44 = vand.u32 4294901760, %v3370_v48  ;;  %v1130_v47 = vsub.f32 %v3314_v24, %v3861_v59  ;;  %v1137_v51 = vsub.f32 %v3318_v3, %v3862_v26 }
  0x9e   :  { %2479 = vmatprep.subr.bf16.mxu0 %v3230_v53  ;;  %1073 = vmatprep.mubr.f32.mxu0 %v1072_v63  ;;  %v3400_v30 = vpack.c.bf16 %v1006_v8, %v1003_v28  ;;  %v1263_v59 = vsub.f32 %v3341_v14, %v3778_v62  ;;  %v3416_v28 = vld [vmem:[#allocation5 + $0x1f8] sm:$0xff]  ;;  %v3420_v16 = vsub.f32 %v83_v10, %v1006_v8  ;;  %v3865_v10 = vand.u32 4294901760, %v3383_v13 }
  0x9f   :  { %3860 = vst [vmem:[#allocation24_spill] sm:$0xff] %v3385_v1  ;;  %v3425_v63 = vsub.f32 %v3370_v48, %v3781_v44  ;;  %v1131_v60 = vand.u32 4294901760, %v1130_v47  ;;  %v1138_v26 = vand.u32 4294901760, %v1137_v51  ;;  %v3447_v47 = vld [vmem:[#allocation5 + $0x178] sm:$0xff]  ;;  %v3866_v44 = vand.u32 4294901760, %v3345_v39 }
  0xa0   :  { %2473 = vmatpush3.bf16.msra.mxu1 %v3841_v52  ;;  %v3863_v52 = vand.u32 4294901760, %v3339_v42  ;;  %v1264_v51 = vand.u32 4294901760, %v1263_v59  ;;  %v3868_v62 = vand.u32 4294901760, %v3380_v4 }
  0xa1   :  { %2481 = vmatpush3.bf16.msra.mxu0 %v3245_v0  ;;  %2507 = vmatprep.subr.bf16.mxu1 %v3293_v19  ;;  %v3414_v19 = vld [vmem:[#allocation5 + $0x1f0] sm:$0xff]  ;;  %v3873_v0 = vand.u32 4294901760, %v3420_v16 }
  0xa2   :  { %v1256_v27 = vsub.f32 %v3339_v42, %v3863_v52  ;;  %2483 = vmatprep.subr.bf16.mxu0 %v3263_v6  ;;  %v2518_v52 = vpack.c.bf16 %v1250_v23, %v1243_v17  ;;  %v3864_v6 = vand.u32 4294901760, %v3374_v49  ;;  %v1270_v17 = vsub.f32 %v3380_v4, %v3868_v62 }
  0xa3   :  { %967 = vmatmul.mubr.f32.vlgmr.msra.gmra.mrb[4].mxu1 %v3005_v29  ;;  %v1012_v29 = vand.u32 4294901760, %v3405_v18  ;;  %v3869_v23 = vand.u32 4294901760, %v3385_v1  ;;  %v1018_v62 = vand.u32 4294901760, %v3447_v47 }
  0xa4   :  { %2509 = vmatpush3.bf16.msra.mxu1 %v3306_v41  ;;  %v3432_v11 = vsub.f32 %v3374_v49, %v3864_v6  ;;  %1309 = vmatprep.mubr.f32.mxu1 %v3251_v58  ;;  %v1257_v8 = vand.u32 4294901760, %v1256_v27  ;;  %v3441_v41 = vsub.f32 %v3383_v13, %v3865_v10  ;;  %v3445_v6 = vld [vmem:[#allocation5 + $0x170] sm:$0xff]  ;;  %v3867_v27 = vand.u32 4294901760, %v3366_v20 }
  0xa5   :  { %2485 = vmatpush3.bf16.msra.mxu0 %v3270_v34  ;;  %2511 = vmatprep.subr.bf16.mxu1 %v3335_v40  ;;  %v1144_v40 = vsub.f32 %v3345_v39, %v3866_v44  ;;  %v1277_v58 = vsub.f32 %v3385_v1, %v3869_v23  ;;  %v2520_v44 = vpack.c.bf16 %v1138_v26, %v1131_v60  ;;  %v3870_v23 = vand.u32 4294901760, %v3414_v19 }
  0xa6   :  { %2487 = vmatprep.subr.bf16.mxu0 %v3295_v57  ;;  %v1151_v10 = vsub.f32 %v3366_v20, %v3867_v27  ;;  %v3465_v57 = vand.u32 4294901760, %v3218_v25  ;;  %v3469_v27 = vsub.f32 %v3405_v18, %v1012_v29  ;;  %v1015_v20 = vand.u32 4294901760, %v3445_v6 }
  0xa7   :  { %v3477_v59 = vsub.f32 %v3414_v19, %v3870_v23  ;;  %v3871_v34 = vand.u32 4294901760, %v3416_v28  ;;  %v2522_v60 = vpack.c.bf16 %v1264_v51, %v1257_v8  ;;  %v1145_v1 = vand.u32 4294901760, %v1144_v40 }
  0xa8   :  { %2513 = vmatpush3.bf16.msra.mxu1 %v3354_v5  ;;  %v1278_v4 = vand.u32 4294901760, %v1277_v58  ;;  %v3872_v39 = vand.u32 4294901760, %v3389_v55  ;;  %v3495_v18 = vsub.f32 %v3218_v25, %v3465_v57  ;;  %v3498_v26 = vsub.f32 %v3445_v6, %v1015_v20 }
  0xa9   :  { %2489 = vmatpush3.bf16.msra.mxu0 %v3312_v12  ;;  %2515 = vmatprep.subr.bf16.mxu1 %v2514_v61  ;;  %v3482_v5 = vsub.f32 %v3416_v28, %v3871_v34  ;;  %v1152_v12 = vand.u32 4294901760, %v1151_v10  ;;  %v1271_v61 = vand.u32 4294901760, %v1270_v17  ;;  %v1165_v34 = vsub.f32 %v3420_v16, %v3873_v0 }
  0xaa   :  { %2491 = vmatprep.subr.bf16.mxu0 %v3337_v9  ;;  %v1158_v23 = vsub.f32 %v3389_v55, %v3872_v39  ;;  %v3501_v8 = vsub.f32 %v3447_v47, %v1018_v62  ;;  %v3874_v0 = vand.u32 4294901760, %v3425_v63  ;;  %v3875_v25 = vand.u32 4294901760, %v3432_v11 }
  0xab   :  { %v3876_v51 = vand.u32 4294901760, %v3370_v48  ;;  %v3877_v40 = vand.u32 4294901760, %v3374_v49  ;;  %v2526_v58 = vpack.c.bf16 %v1278_v4, %v1271_v61  ;;  %v1076_v6 = vand.u32 4294901760, %v3495_v18 }
  0xac   :  { %2517 = vmatpush3.bf16.msra.mxu1 %v2516_v56  ;;  %v1284_v39 = vsub.f32 %v3425_v63, %v3874_v0  ;;  %v1291_v56 = vsub.f32 %v3432_v11, %v3875_v25  ;;  %v2524_v0 = vpack.c.bf16 %v1152_v12, %v1145_v1  ;;  %v1166_v25 = vand.u32 4294901760, %v1165_v34 }
  0xad   :  { %2493 = vmatpush3.bf16.msra.mxu0 %v3356_v15  ;;  %2519 = vmatprep.subr.bf16.mxu1 %v2518_v52  ;;  %v3519_v10 = vpack.c.bf16 %v3877_v40, %v3876_v51  ;;  %v3878_v52 = vand.u32 4294901760, %v3383_v13  ;;  %v1159_v15 = vand.u32 4294901760, %v1158_v23  ;;  %v3879_v47 = vand.u32 4294901760, %v3441_v41 }
  0xae   :  { %2495 = vmatprep.subr.bf16.mxu0 %v3378_v50  ;;  %v3880_v48 = vand.u32 4294901760, %v3469_v27  ;;  %v1185_v51 = vand.u32 4294901760, %v3498_v26  ;;  %v1192_v13 = vand.u32 4294901760, %v3501_v8  ;;  %v1285_v12 = vand.u32 4294901760, %v1284_v39 }
  0xaf   :  { %v3523_v17 = vpack.c.bf16 %v1012_v29, %v3878_v52  ;;  %v1172_v50 = vsub.f32 %v3441_v41, %v3879_v47  ;;  %v1292_v4 = vand.u32 4294901760, %v1291_v56  ;;  %v3881_v1 = vand.u32 4294901760, %v3477_v59 }
  0xb0   :  { %2521 = vmatpush3.bf16.msra.mxu1 %v2520_v44  ;;  %v1179_v49 = vsub.f32 %v3469_v27, %v3880_v48  ;;  %v3882_v44 = vand.u32 4294901760, %v3482_v5  ;;  %v3883_v23 = vand.u32 4294901760, %v3414_v19  ;;  %v3884_v34 = vand.u32 4294901760, %v3416_v28 }
  0xb1   :  { %2497 = vmatpush3.bf16.msra.mxu0 %v3400_v30  ;;  %2523 = vmatprep.subr.bf16.mxu1 %v2522_v60  ;;  %v1298_v29 = vsub.f32 %v3477_v59, %v3881_v1  ;;  %v2528_v40 = vpack.c.bf16 %v1166_v25, %v1159_v15  ;;  %v1077_v60 = vsub.f32 %v3495_v18, %v1076_v6  ;;  %v1173_v39 = vand.u32 4294901760, %v1172_v50 }
  0xb2   :  { %v1305_v61 = vsub.f32 %v3482_v5, %v3882_v44  ;;  %2499 = vmatprep.subr.bf16.mxu0 %v3519_v10  ;;  %v3546_v47 = vpack.c.bf16 %v3884_v34, %v3883_v23  ;;  %v1180_v56 = vand.u32 4294901760, %v1179_v49  ;;  %v1186_v52 = vsub.f32 %v3498_v26, %v1185_v51  ;;  %v3885_v23 = vld [vmem:[#allocation17_spill] sm:$0xff] }
  0xb3   :  { %v1193_v19 = vsub.f32 %v3501_v8, %v1192_v13  ;;  %v3558_v28 = vpack.c.bf16 %v1018_v62, %v1015_v20  ;;  %v2530_v15 = vpack.c.bf16 %v1292_v4, %v1285_v12  ;;  %v1299_v25 = vand.u32 4294901760, %v1298_v29 }
  0xb4   :  { %2525 = vmatpush3.bf16.msra.mxu1 %v2524_v0  ;;  %v1306_v48 = vand.u32 4294901760, %v1305_v61  ;;  %v2538_v50 = vpack.c.bf16 %v3185_v36, %v3183_v54  ;;  %v1078_v0 = vand.u32 4294901760, %v1077_v60  ;;  %v2532_v49 = vpack.c.bf16 %v1180_v56, %v1173_v39 }
  0xb5   :  { %2501 = vmatpush3.bf16.msra.mxu0 %v3523_v17  ;;  %2527 = vmatprep.subr.bf16.mxu1 %v2526_v58  ;;  %v1187_v1 = vand.u32 4294901760, %v1186_v52  ;;  %v1194_v44 = vand.u32 4294901760, %v1193_v19  ;;  %v2540_v20 = vpack.c.bf16 %v3192_v32, %v3190_v31  ;;  %v2542_v58 = vpack.c.bf16 %v3232_v38, %v3225_v35  ;;  %v3888_v52 = vld [vmem:[#allocation16_spill] sm:$0xff]  ;;  %v3889_v19 = vld [vmem:[#allocation13_spill] sm:$0xff] }
  0xb6   :  { %2503 = vmatprep.subr.bf16.mxu0 %v3546_v47  ;;  %v2534_v62 = vpack.c.bf16 %v1306_v48, %v1299_v25  ;;  %v2544_v4 = vpack.c.bf16 %v3249_v43, %v3247_v46  ;;  %v2546_v29 = vpack.c.bf16 %v3265_v21, %v3253_v37  ;;  %v2548_v61 = vpack.c.bf16 %v3275_v2, %v3273_v45  ;;  %v3891_v25 = vld [vmem:[#allocation21_spill] sm:$0xff] }
  0xb7   :  { %v2536_v12 = vpack.c.bf16 %v1194_v44, %v1187_v1  ;;  %v2550_v34 = vpack.c.bf16 %v3885_v23, %v3286_v33  ;;  %v3887_v60 = vand.u32 4294901760, %v3279_v7  ;;  %v2552_v39 = vpack.c.bf16 %v3318_v3, %v3314_v24  ;;  %v3895_v1 = vld [vmem:[#allocation14_spill] sm:$0xff] }
  0xb8   :  { %2529 = vmatpush3.bf16.msra.mxu1 %v2528_v40  ;;  %v3886_v40 = vld [vmem:[#allocation11_spill] sm:$0xff]  ;;  %v2554_v56 = vpack.c.bf16 %v3341_v14, %v3339_v42  ;;  %v2560_v44 = vpack.c.bf16 %v3420_v16, %v3389_v55 }
  0xb9   :  { %2505 = vmatpush3.bf16.msra.mxu0 %v3558_v28  ;;  %2531 = vmatprep.subr.bf16.mxu1 %v2530_v15  ;;  %v3890_v15 = vld [vmem:[#allocation19_spill] sm:$0xff] }
  0xba   :  { %2539 = vmatprep.subr.bf16.mxu0 %v2538_v50  ;;  %v2556_v48 = vpack.c.bf16 %v3891_v25, %v3890_v15  ;;  %v3893_v50 = vld [vmem:[#allocation24_spill] sm:$0xff] }
  0xbc   :  { %1079 = vmatmul.mubr.f32.vlgmr.msra.gmra.mrb[6].mxu0 %v1078_v0  ;;  %2533 = vmatpush3.bf16.msra.mxu1 %v2532_v49  ;;  %v3894_v49 = vld [vmem:[#allocation15_spill] sm:$0xff] }
  0xbd   :  { %2541 = vmatpush3.bf16.msra.mxu0 %v2540_v20  ;;  %2535 = vmatprep.subr.bf16.mxu1 %v2534_v62  ;;  %v2562_v20 = vpack.c.bf16 %v3432_v11, %v3425_v63  ;;  %v3896_v62 = vld [vmem:[#allocation18_spill] sm:$0xff] }
  0xbe   :  { %2543 = vmatprep.subr.bf16.mxu0 %v2542_v58  ;;  %1446 = vmatprep.mubr.f32.mxu0 %v3279_v7  ;;  %v3892_v7 = vld [vmem:[#allocation23_spill] sm:$0xff]  ;;  %v2564_v58 = vpack.c.bf16 %v3469_v27, %v3441_v41 }
  0xbf   :  { %v2558_v0 = vpack.c.bf16 %v3893_v50, %v3892_v7 }
  0xc0   :  { %2537 = vmatpush3.bf16.msra.mxu1 %v2536_v12  ;;  %v2566_v12 = vpack.c.bf16 %v3482_v5, %v3477_v59 }
  0xc1   :  { %2545 = vmatpush3.bf16.msra.mxu0 %v2544_v4  ;;  %2571 = vmatprep.subr.bf16.mxu1 %v3221_v22  ;;  %v3897_v4 = vld [vmem:[#allocation20_spill] sm:$0xff] }
  0xc2   :  { %2547 = vmatprep.subr.bf16.mxu0 %v2546_v29  ;;  %v3898_v29 = vld [vmem:[#allocation22_spill] sm:$0xff] }
  0xc3   :  { %1311 = vmatmul.mubr.f32.vlgmr.msra.gmra.mrb[6].mxu1 %v3465_v57 }
  0xc4   :  { %2573 = vmatpush3.bf16.msra.mxu1 %v3886_v40  ;;  %1553 = vmatprep.mubr.f32.mxu1 %v3887_v60  ;;  %v3900_v60 = vand.u32 4294901760, %v3185_v36  ;;  %v3906_v36 = vand.u32 4294901760, %v3249_v43  ;;  %v3912_v43 = vand.u32 4294901760, %v3286_v33  ;;  %v3917_v33 = vand.u32 4294901760, %v3341_v14 }
  0xc5   :  { %2549 = vmatpush3.bf16.msra.mxu0 %v2548_v61  ;;  %2575 = vmatprep.subr.bf16.mxu1 %v3230_v53  ;;  %v2568_v61 = vpack.c.bf16 %v3501_v8, %v3498_v26  ;;  %v3923_v14 = vand.u32 4294901760, %v3420_v16  ;;  %v3929_v16 = vand.u32 4294901760, %v3482_v5 }
  0xc6   :  { %2551 = vmatprep.subr.bf16.mxu0 %v2550_v34  ;;  %v3899_v34 = vand.u32 4294901760, %v3183_v54  ;;  %v3905_v54 = vand.u32 4294901760, %v3247_v46  ;;  %v3911_v46 = vand.u32 4294901760, %v3275_v2  ;;  %v3916_v2 = vand.u32 4294901760, %v3339_v42 }
  0xc7   :  { %v3922_v42 = vand.u32 4294901760, %v3389_v55  ;;  %v3928_v55 = vand.u32 4294901760, %v3477_v59 }
  0xc8   :  { %2577 = vmatpush3.bf16.msra.mxu1 %v3888_v52 }
  0xc9   :  { %2553 = vmatpush3.bf16.msra.mxu0 %v2552_v39  ;;  %2579 = vmatprep.subr.bf16.mxu1 %v3889_v19  ;;  %v2602_v39 = vpack.c.bf16 %v3900_v60, %v3899_v34 }
  0xca   :  { %2555 = vmatprep.subr.bf16.mxu0 %v2554_v56  ;;  %v3901_v56 = vand.u32 4294901760, %v3190_v31  ;;  %v2608_v31 = vpack.c.bf16 %v3906_v36, %v3905_v54 }
  0xcc   :  { %2581 = vmatpush3.bf16.msra.mxu1 %v3894_v49 }
  0xcd   :  { %2557 = vmatpush3.bf16.msra.mxu0 %v2556_v48  ;;  %2583 = vmatprep.subr.bf16.mxu1 %v3895_v1  ;;  %v3902_v48 = vand.u32 4294901760, %v3192_v32  ;;  %v3907_v32 = vand.u32 4294901760, %v3253_v37  ;;  %v3913_v37 = vand.u32 4294901760, %v3885_v23  ;;  %v2618_v23 = vpack.c.bf16 %v3917_v33, %v3916_v2 }
  0xce   :  { %2559 = vmatprep.subr.bf16.mxu0 %v2558_v0 }
  0xcf   :  { %v2604_v0 = vpack.c.bf16 %v3902_v48, %v3901_v56  ;;  %v2614_v60 = vpack.c.bf16 %v3913_v37, %v3912_v43 }
  0xd0   :  { %2585 = vmatpush3.bf16.msra.mxu1 %v3896_v62 }
  0xd1   :  { %2561 = vmatpush3.bf16.msra.mxu0 %v2560_v44  ;;  %2587 = vmatprep.subr.bf16.mxu1 %v3337_v9  ;;  %v3903_v44 = vand.u32 4294901760, %v3225_v35  ;;  %v3908_v35 = vand.u32 4294901760, %v3265_v21  ;;  %v3915_v21 = vand.u32 4294901760, %v3318_v3  ;;  %v3921_v3 = vand.u32 4294901760, %v3893_v50 }
  0xd2   :  { %2563 = vmatprep.subr.bf16.mxu0 %v2562_v20  ;;  %v3904_v20 = vand.u32 4294901760, %v3232_v38  ;;  %v3909_v38 = vld [vmem:[#allocation12_spill] sm:$0xff]  ;;  %v3927_v50 = vand.u32 4294901760, %v3469_v27 }
  0xd4   :  { %2589 = vmatpush3.bf16.msra.mxu1 %v3897_v4 }
  0xd5   :  { %2565 = vmatpush3.bf16.msra.mxu0 %v2564_v58  ;;  %2591 = vmatprep.subr.bf16.mxu1 %v3898_v29  ;;  %v2606_v58 = vpack.c.bf16 %v3904_v20, %v3903_v44 }
  0xd6   :  { %2567 = vmatprep.subr.bf16.mxu0 %v2566_v12  ;;  %v2610_v12 = vpack.c.bf16 %v3908_v35, %v3907_v32 }
  0xd8   :  { %2593 = vmatpush3.bf16.msra.mxu1 %v3400_v30 }
  0xd9   :  { %2569 = vmatpush3.bf16.msra.mxu0 %v2568_v61  ;;  %2595 = vmatprep.subr.bf16.mxu1 %v3519_v10  ;;  %v3910_v61 = vand.u32 4294901760, %v3273_v45 }
  0xda   :  { %2603 = vmatprep.subr.bf16.mxu0 %v2602_v39 }
  0xdb   :  { %v2612_v34 = vpack.c.bf16 %v3911_v46, %v3910_v61 }
  0xdc   :  { %1449 = vmatmul.mubr.f32.vlgmr.msra.gmra.mrb[8].mxu0 %v3495_v18  ;;  %2597 = vmatpush3.bf16.msra.mxu1 %v3523_v17  ;;  %v3918_v18 = vand.u32 4294901760, %v3890_v15  ;;  %v3925_v15 = vand.u32 4294901760, %v3432_v11 }
  0xdd   :  { %2605 = vmatpush3.bf16.msra.mxu0 %v2604_v0  ;;  %2599 = vmatprep.subr.bf16.mxu1 %v3546_v47 }
  0xde   :  { %2607 = vmatprep.subr.bf16.mxu0 %v2606_v58  ;;  %1723 = vmatprep.mubr.f32.mxu0 %v3909_v38 }
  0xe0   :  { %2601 = vmatpush3.bf16.msra.mxu1 %v3558_v28 }
  0xe1   :  { %2609 = vmatpush3.bf16.msra.mxu0 %v2608_v31  ;;  %2635 = vmatprep.subr.bf16.mxu1 %v3221_v22  ;;  %v3914_v22 = vand.u32 4294901760, %v3314_v24  ;;  %v3920_v24 = vand.u32 4294901760, %v3892_v7  ;;  %v3926_v7 = vand.u32 4294901760, %v3441_v41 }
  0xe2   :  { %2611 = vmatprep.subr.bf16.mxu0 %v2610_v12 }
  0xe3   :  { %1557 = vmatmul.mubr.f32.vlgmr.msra.gmra.mrb[8].mxu1 %v1076_v6  ;;  %v2616_v45 = vpack.c.bf16 %v3915_v21, %v3914_v22 }
  0xe4   :  { %2637 = vmatpush3.bf16.msra.mxu1 %v3886_v40  ;;  %1827 = vmatprep.mubr.f32.mxu1 %v3909_v38  ;;  %v2622_v40 = vpack.c.bf16 %v3921_v3, %v3920_v24 }
  0xe5   :  { %2613 = vmatpush3.bf16.msra.mxu0 %v2612_v34  ;;  %2639 = vmatprep.subr.bf16.mxu1 %v3230_v53  ;;  %v3919_v53 = vand.u32 4294901760, %v3891_v25 }
  0xe6   :  { %2615 = vmatprep.subr.bf16.mxu0 %v2614_v60 }
  0xe7   :  { %v2620_v6 = vpack.c.bf16 %v3919_v53, %v3918_v18 }
  0xe8   :  { %2641 = vmatpush3.bf16.msra.mxu1 %v3888_v52  ;;  %v2624_v52 = vpack.c.bf16 %v3923_v14, %v3922_v42 }
  0xe9   :  { %2617 = vmatpush3.bf16.msra.mxu0 %v2616_v45  ;;  %2643 = vmatprep.subr.bf16.mxu1 %v3889_v19  ;;  %v3924_v19 = vand.u32 4294901760, %v3425_v63 }
  0xea   :  { %2619 = vmatprep.subr.bf16.mxu0 %v2618_v23 }
  0xeb   :  { %v2626_v25 = vpack.c.bf16 %v3925_v15, %v3924_v19 }
  0xec   :  { %2645 = vmatpush3.bf16.msra.mxu1 %v3894_v49  ;;  %v2628_v49 = vpack.c.bf16 %v3927_v50, %v3926_v7 }
  0xed   :  { %2621 = vmatpush3.bf16.msra.mxu0 %v2620_v6  ;;  %2647 = vmatprep.subr.bf16.mxu1 %v3895_v1  ;;  %v2630_v1 = vpack.c.bf16 %v3929_v16, %v3928_v55 }
  0xee   :  { %2623 = vmatprep.subr.bf16.mxu0 %v2622_v40 }
  0xf0   :  { %2649 = vmatpush3.bf16.msra.mxu1 %v3896_v62 }
  0xf1   :  { %2625 = vmatpush3.bf16.msra.mxu0 %v2624_v52  ;;  %2651 = vmatprep.subr.bf16.mxu1 %v3337_v9  ;;  %v2632_v9 = vpack.c.bf16 %v1192_v13, %v1185_v51 }
  0xf2   :  { %2627 = vmatprep.subr.bf16.mxu0 %v2626_v25 }
  0xf4   :  { %2653 = vmatpush3.bf16.msra.mxu1 %v3897_v4 }
  0xf5   :  { %2629 = vmatpush3.bf16.msra.mxu0 %v2628_v49  ;;  %2655 = vmatprep.subr.bf16.mxu1 %v3898_v29 }
  0xf6   :  { %2631 = vmatprep.subr.bf16.mxu0 %v2630_v1 }
  0xf8   :  { %2657 = vmatpush3.bf16.msra.mxu1 %v3400_v30 }
  0xf9   :  { %2633 = vmatpush3.bf16.msra.mxu0 %v2632_v9  ;;  %2659 = vmatprep.subr.bf16.mxu1 %v3519_v10 }
  0xfc   :  { %1725 = vmatmul.mubr.f32.vlgmr.msra.gmra.mrb[10].mxu0 %v3465_v57  ;;  %2661 = vmatpush3.bf16.msra.mxu1 %v3523_v17 }
  0xfd   :  { %2663 = vmatprep.subr.bf16.mxu1 %v3546_v47 }
 0x100   :  { %2665 = vmatpush3.bf16.msra.mxu1 %v3558_v28 }
 0x103   :  { %1829 = vmatmul.mubr.f32.vlgmr.msra.gmra.mrb[10].mxu1 %v3465_v57 }
 0x12f   :  { %v1894_v63 = vpop.f32.mrb[0].mxu0 }
 0x130   :  { %v1895_v11 = vpop.f32.mrb[1].mxu0 }
 0x131   :  { %v1896_v41 = vadd.f32 %v1895_v11, %v1894_v63 }
 0x136   :  { %v1929_v59 = vpop.f32.mrb[0].mxu1 }
 0x137   :  { %v1930_v27 = vpop.f32.mrb[1].mxu1 }
 0x138   :  { %v1931_v5 = vadd.f32 %v1930_v27, %v1929_v59 }
 0x13a   :  { %v451_v30 = vadd.f32 %v1931_v5, %v1896_v41 }
 0x14f   :  { %v1964_v26 = vpop.f32.mrb[2].mxu0 }
 0x150   :  { %v1965_v8 = vpop.f32.mrb[3].mxu0 }
 0x151   :  { %v1966_v10 = vadd.f32 %v1965_v8, %v1964_v26 }
 0x153   :  { %v589_v51 = vadd.f32 %v1966_v10, %v451_v30 }
 0x156   :  { %v1999_v13 = vpop.f32.mrb[2].mxu1 }
 0x157   :  { %v2000_v62 = vpop.f32.mrb[3].mxu1 }
 0x158   :  { %v2001_v17 = vadd.f32 %v2000_v62, %v1999_v13 }
 0x15a   :  { %v697_v4 = vadd.f32 %v2001_v17, %v589_v51 }
 0x16f   :  { %v2034_v47 = vpop.f32.mrb[4].mxu0 }
 0x170   :  { %v2035_v29 = vpop.f32.mrb[5].mxu0 }
 0x171   :  { %v2036_v28 = vadd.f32 %v2035_v29, %v2034_v47 }
 0x173   :  { %v865_v39 = vadd.f32 %v2036_v28, %v697_v4 }
 0x176   :  { %v2069_v57 = vpop.f32.mrb[4].mxu1 }
 0x177   :  { %v2070_v56 = vpop.f32.mrb[5].mxu1 }
 0x178   :  { %v2071_v48 = vadd.f32 %v2070_v56, %v2069_v57 }
 0x17a   :  { %v969_v0 = vadd.f32 %v2071_v48, %v865_v39 }
 0x18f   :  { %v2104_v44 = vpop.f32.mrb[6].mxu0 }
 0x190   :  { %v2105_v20 = vpop.f32.mrb[7].mxu0 }
 0x191   :  { %v2106_v58 = vadd.f32 %v2105_v20, %v2104_v44 }
 0x193   :  { %v1081_v54 = vadd.f32 %v2106_v58, %v969_v0 }
 0x196   :  { %v2139_v36 = vpop.f32.mrb[6].mxu1 }
 0x197   :  { %v2140_v31 = vpop.f32.mrb[7].mxu1 }
 0x198   :  { %v2141_v32 = vadd.f32 %v2140_v31, %v2139_v36 }
 0x19a   :  { %v1313_v35 = vadd.f32 %v2141_v32, %v1081_v54 }
 0x1af   :  { %v2174_v12 = vpop.f32.mrb[8].mxu0 }
 0x1b0   :  { %v2175_v38 = vpop.f32.mrb[9].mxu0 }
 0x1b1   :  { %v2176_v61 = vadd.f32 %v2175_v38, %v2174_v12 }
 0x1b3   :  { %v1451_v46 = vadd.f32 %v2176_v61, %v1313_v35 }
 0x1b6   :  { %v2209_v34 = vpop.f32.mrb[8].mxu1 }
 0x1b7   :  { %v2210_v43 = vpop.f32.mrb[9].mxu1 }
 0x1b8   :  { %v2211_v37 = vadd.f32 %v2210_v43, %v2209_v34 }
 0x1ba   :  { %v1559_v60 = vadd.f32 %v2211_v37, %v1451_v46 }
 0x1cf   :  { %v2244_v22 = vpop.f32.mrb[10].mxu0 }
 0x1d0   :  { %v2245_v21 = vpop.f32.mrb[11].mxu0 }
 0x1d1   :  { %v2246_v45 = vadd.f32 %v2245_v21, %v2244_v22 }
 0x1d3   :  { %v1727_v2 = vadd.f32 %v2246_v45, %v1559_v60 }
 0x1d6   :  { %v2279_v33 = vpop.f32.mrb[10].mxu1 }
 0x1d7   :  { %v2280_v23 = vpop.f32.mrb[11].mxu1 }
 0x1d8   :  { %v2281_v18 = vadd.f32 %v2280_v23, %v2279_v33 }
 0x1da   :  { %v1831_v53 = vadd.f32 %v2281_v18, %v1727_v2 }
 0x1dc   :  { %v1834_v6 = vand.u32 2147483647, %v1831_v53  ;;  %vm1841_vm0 = vcmp.ge.f32.partialorder %v1831_v53, 0.0 }
 0x1de   :  { %v1835_v24 = vsub.f32 0.0, %v1834_v6 }
 0x1e0   :  { %v1836_v3 = vmul.f32 1.442695, %v1835_v24 }
 0x1e2   :  { %2673 = vpow2.f32 %v1836_v3 }
 0x1ec   :  { %v2674_v40 = vpop.eup %2673 }
 0x1ed   :  { %v1838_v42 = vadd.f32 1.0, %v2674_v40 }
 0x1ef   :  { %2675 = vrcp.f32 %v1838_v42 }
 0x1f9   :  { %v2676_v14 = vpop.eup %2675 }
 0x1fa   :  { %v1842_v52 = vmul.f32 %v2676_v14, %v2674_v40 }
 0x1fc   :  { %v1843_v19 = vsel %vm1841_vm0, %v2676_v14, %v1842_v52 }
 0x1fd   :  { %v1844_v15 = vmul.f32 %v1843_v19, %v1831_v53 }
 0x1ff   :  { %1845 = vst [vmem:[#allocation7] sm:$0xf] %v1844_v15 }
 0x200   :  { %2732 = shalt.err (!%p2729_p6)
}
 0x201   :  { %s2733_s10 = scalar_lea.hbm %s3715_s2, 64 }
 0x202   :  { %p2734_p7 = scmp.ne.s32.totalorder %s3715_s2, %s2733_s10  ;;  %p2737_p8 = scmp.lt.u32.totalorder %s2733_s10, %s3715_s2 }
 0x204   :  { %p2739_p9 = pnand %p2737_p8, %p2734_p7 }
 0x206   :  { %2742 = shalt.err (!%p2739_p9)
}
 0x207   :  { %1855 = dma.vmem_to_hbm [thread:$0]  %s1853_s6, 64, %s3715_s2, [#allocation4]  }
 0x208   :  { %2747 = dma.done.wait [#allocation4], 64  }
 0x209   :  { %2748 = vsyncadd [#allocation4], 4294967232 }
 0x20a   :  { %1859 = vsyncpa [#allocation3], 1 }
 0x20b   :  { %1860 = vsyncpa [#allocation6], 1 }
 0x20c   :  { %1861 = vsyncpa [#allocation4], 1 }

</bundles_post_ra>
